<compile_context>
chip_gen: v6e
topology: v6e:2x2x1
jax: 0.10.0
libtpu: 0.0.40
codegen_flags: <defaults>
</compile_context>

<pallas_src>
import functools

import jax
import jax.numpy as jnp
from jax.experimental import pallas as pl
from jax.experimental.pallas import tpu as pltpu


def _cdiv(a, b):
    return -(-a // b)


def _round_up(x, m):
    return _cdiv(x, m) * m


def _complex_conv1d_kernel(x_ref, wr_ref, wi_ref, ws_ref, bre_ref, bim_ref,
                           out_ref, *, taps, c_out, n_phase, l_phase,
                           l_blk, l_sub, l_load):
    """One (batch-block, length-block) grid step.

    x_ref   : (b_blk, 2*n_phase*l_phase)  VMEM  flattened input planes;
              plane (chan c, phase p) starts at lane (c*n_phase + p)*l_phase
    wr_ref, wi_ref, ws_ref : (K, c_out)   SMEM  Wr, Wi, Wr+Wi tap tables
    bre_ref, bim_ref       : (c_out,)     SMEM  br-bi, br+bi
    out_ref : (2*c_out, b_blk, l_blk)     VMEM  channel-major output block
    """
    blk0 = pl.program_id(1) * l_blk
    phases = sorted({p for p, _ in taps})

    # Static sub-tile loop: nothing is carried across sub-tiles, so each
    # iteration's temporaries die before the next one starts.
    for s in range(l_blk // l_sub):
        base = blk0 + s * l_sub

        # One 128-aligned slab load per (phase, plane), plus ONE hoisted
        # Karatsuba sum slab per phase (instead of one add per tap).
        base_r, base_i, base_s = {}, {}, {}
        for p in phases:
            r_start = pl.multiple_of(base + p * l_phase, 128)
            i_start = pl.multiple_of(base + (n_phase + p) * l_phase, 128)
            r = x_ref[:, pl.ds(r_start, l_load)]
            i = x_ref[:, pl.ds(i_start, l_load)]
            base_r[p], base_i[p], base_s[p] = r, i, r + i

        # Taps-outer / channels-inner: per tap, the three windows are live
        # only within this iteration; accumulators (3*c_out) are the only
        # long-lived values.
        acc1 = [None] * c_out   # conv(xr, Wr)
        acc2 = [None] * c_out   # conv(xi, Wi)
        acc3 = [None] * c_out   # conv(xr+xi, Wr+Wi)
        for k, (p, q) in enumerate(taps):
            wr_win = base_r[p][:, q:q + l_sub]
            wi_win = base_i[p][:, q:q + l_sub]
            ws_win = base_s[p][:, q:q + l_sub]
            for c in range(c_out):
                t1 = wr_win * wr_ref[k, c]
                t2 = wi_win * wi_ref[k, c]
                t3 = ws_win * ws_ref[k, c]
                if k == 0:
                    acc1[c], acc2[c], acc3[c] = t1, t2, t3
                else:
                    acc1[c] = acc1[c] + t1
                    acc2[c] = acc2[c] + t2
                    acc3[c] = acc3[c] + t3

        sub = slice(s * l_sub, (s + 1) * l_sub)
        for c in range(c_out):
            real = acc1[c] - acc2[c] + bre_ref[c]            # + (br - bi)
            imag = acc3[c] - acc1[c] - acc2[c] + bim_ref[c]  # + (br + bi)
            out_ref[c, :, sub] = real.astype(out_ref.dtype)
            out_ref[c + c_out, :, sub] = imag.astype(out_ref.dtype)


def complex_conv1d(x, wr, wi, br, bi, *, stride=1, padding=0, b_blk=None):
    """Pallas implementation of ComplexConv1d.forward.

    x       : (B, 2, L)       channel 0 = real plane, channel 1 = imag plane
    wr, wi  : (C_out, 1, K)   PyTorch Conv1d weights of real_conv / imag_conv
    br, bi  : (C_out,)        biases of real_conv / imag_conv
    returns : (B, 2*C_out, L_out)  == torch.cat((real, imag), dim=1)
    """
    B, two, L = x.shape
    assert two == 2, "input must carry (real, imag) in the channel dim"
    c_out, c_in, K = wr.shape
    assert c_in == 1, "module slices single-channel planes; in_channels must be 1"
    assert K <= 128, "kernel taps must fit inside the 128-lane halo"
    l_out = (L + 2 * padding - K) // stride + 1
    assert l_out > 0

    n_phase = stride
    taps = tuple((k % stride, k // stride) for k in range(K))

    # ---- tiling --------------------------------------------------------------
    if b_blk is None:
        b_blk = 8 if B >= 8 else B             # ragged last batch block is
    assert b_blk == B or b_blk % 8 == 0        # handled by Pallas writeback clamp
    n_b = _cdiv(B, b_blk)
    sub_rows = _cdiv(min(b_blk, 8) * max(b_blk // 8, 1), 8)  # vreg rows / value

    # Sub-tile width chosen under a ~44-vreg live-set budget:
    #   3*c_out accumulators + 3 windows (u vregs each) +
    #   3*n_phase base slabs (u+1 vregs each),  u = sub_rows * l_sub / 128.
    def est_vregs(u):
        return (3 * c_out + 3) * u + 3 * n_phase * (u + 1)

    l_sub = 128
    for cand in (512, 256):
        if est_vregs(sub_rows * cand // 128) <= 44:
            l_sub = cand
            break
    l_sub = min(l_sub, _round_up(l_out, 128))

    n_sub_total = _cdiv(l_out, l_sub)
    n_sub_blk = min(n_sub_total, max(1, 1024 // l_sub))  # <=1024-lane out block
    n_l = _cdiv(n_sub_total, n_sub_blk)
    n_sub_blk = _cdiv(n_sub_total, n_l)                  # rebalance tail waste
    l_blk = n_sub_blk * l_sub
    l_out_p = _round_up(l_out, 128)     # padded out lanes (cropped in wrapper)
    l_halo = 128                        # covers tap offsets (< 128)
    l_phase = n_l * l_blk + l_halo      # per-phase plane length (lane-aligned)
    l_load = l_sub + l_halo
    assert l_sub % 128 == 0 and l_blk % 128 == 0 and l_phase % 128 == 0

    # ---- input relayout: minimal HBM passes ----------------------------------
    # planes[b, (c*n_phase + p)*l_phase + j] = x_padded[b, c, j*stride + p]
    #   stride == 1: pad + FREE reshape (no transpose, no extra HBM pass)
    #   stride  > 1: pad + one polyphase transpose (only strided path pays it)
    tail = l_phase * stride - (L + padding)
    assert tail >= padding
    xp = jnp.pad(x.astype(jnp.float32), ((0, 0), (0, 0), (padding, tail)))
    if stride == 1:
        planes = xp.reshape(B, 2 * l_phase)
    else:
        planes = jnp.transpose(
            xp.reshape(B, 2, l_phase, stride), (0, 1, 3, 2)
        ).reshape(B, 2 * stride * l_phase)

    wr_t = jnp.transpose(wr[:, 0, :], (1, 0)).astype(jnp.float32)   # (K, C_out)
    wi_t = jnp.transpose(wi[:, 0, :], (1, 0)).astype(jnp.float32)
    ws_t = wr_t + wi_t                                              # Karatsuba sum
    b_re = (br - bi).astype(jnp.float32)
    b_im = (br + bi).astype(jnp.float32)

    # ---- VMEM budget (derived from the chip, not hard-coded) ------------------
    try:
        vmem_cap = int(pltpu.get_tpu_info().vmem_capacity_bytes)
    except Exception:                       # conservative fallback (v7x-sized)
        vmem_cap = 64 * 1024 * 1024
    vmem_limit = min(vmem_cap * 3 // 4, 112 * 1024 * 1024)

    in_block = b_blk * 2 * n_phase * l_phase * 4
    out_block = 2 * c_out * b_blk * l_blk * 4
    # TODO(synk): for very long signals, length-tile the input with a manual
    # pltpu.make_async_copy halo DMA instead of keeping the full per-batch-block
    # signal resident in VMEM.
    assert 2 * (in_block + out_block) < vmem_limit - (4 << 20), (
        "signal too long for the fully-resident input block; reduce b_blk or "
        "add halo-DMA length tiling")

    kernel = functools.partial(
        _complex_conv1d_kernel, taps=taps, c_out=c_out, n_phase=n_phase,
        l_phase=l_phase, l_blk=l_blk, l_sub=l_sub, l_load=l_load)

    smem = pl.BlockSpec(memory_space=pltpu.MemorySpace.SMEM)
    # Megacore: split batch (input slab stays resident per core); only split
    # the length axis when there is a single batch block.
    dims = ("parallel", "arbitrary") if n_b > 1 else ("arbitrary", "parallel")

    out_cm = pl.pallas_call(
        kernel,
        out_shape=jax.ShapeDtypeStruct((2 * c_out, B, l_out_p), x.dtype),
        grid=(n_b, n_l),
        in_specs=[
            pl.BlockSpec((b_blk, 2 * n_phase * l_phase), lambda b, l: (b, 0)),
            smem, smem, smem, smem, smem,
        ],
        out_specs=pl.BlockSpec((2 * c_out, b_blk, l_blk),
                               lambda b, l: (0, b, l)),
        compiler_params=pltpu.CompilerParams(
            dimension_semantics=dims, vmem_limit_bytes=vmem_limit),
    )(planes, wr_t, wi_t, ws_t, b_re, b_im)

    # channel-major padded -> NCL cropped; XLA fuses transpose + crop into a
    # single copy (the only extra output-sized pass).
    return jnp.transpose(out_cm, (1, 0, 2))[:, :, :l_out]


def _reference(x, wr, wi, br, bi, stride, padding):
    """Pure-JAX reference mirroring the PyTorch forward."""
    def conv(inp, w, b):
        y = jax.lax.conv_general_dilated(
            inp, w, window_strides=(stride,), padding=[(padding, padding)],
            dimension_numbers=("NCH", "OIH", "NCH"))
        return y + b[None, :, None]
    xr = x[:, 0:1, :]
    xi = x[:, 1:2, :]
    real = conv(xr, wr, br) - conv(xi, wi, bi)
    imag = conv(xi, wr, br) + conv(xr, wi, bi)
    return jnp.concatenate([real, imag], axis=1)


def _make_params(key, c_out, k):
    kwr, kwi, kbr, kbi = jax.random.split(key, 4)
    bound = 1.0 / (1 * k) ** 0.5
    wr = jax.random.uniform(kwr, (c_out, 1, k), jnp.float32, -bound, bound)
    wi = jax.random.uniform(kwi, (c_out, 1, k), jnp.float32, -bound, bound)
    br = jax.random.uniform(kbr, (c_out,), jnp.float32, -bound, bound)
    bi = jax.random.uniform(kbi, (c_out,), jnp.float32, -bound, bound)
    return wr, wi, br, bi


if __name__ == "__main__":
    key = jax.random.PRNGKey(0)

    # (B, C_out, K, stride, padding, L): spec-sized case, strided (polyphase)
    # case, and a multi-batch-block / multi-sub-tile case with ragged batch.
    configs = [
        (2, 4, 3, 1, 1, 16),
        (3, 5, 5, 2, 2, 57),
        (9, 4, 3, 1, 1, 700),
    ]
    for i, (B, C_OUT, K, STRIDE, PAD, L) in enumerate(configs):
        kx, kp, key = jax.random.split(key, 3)
        x = jax.random.normal(kx, (B, 2, L), dtype=jnp.float32)
        wr, wi, br, bi = _make_params(kp, C_OUT, K)

        out = complex_conv1d(x, wr, wi, br, bi, stride=STRIDE, padding=PAD)
        out = jax.block_until_ready(out)

        ref = _reference(x, wr, wi, br, bi, STRIDE, PAD)
        l_out = (L + 2 * PAD - K) // STRIDE + 1
        assert out.shape == (B, 2 * C_OUT, l_out), (i, out.shape)
        err = float(jnp.max(jnp.abs(out - ref)))
        assert err < 1e-4, (i, err)

    print("KERNEL_OK")
</pallas_src>

<mosaic_0001>
module attributes {stable_mosaic.version = 11 : i64} {
  func.func @_complex_conv1d_kernel(%arg0: i32, %arg1: i32, %arg2: memref<2x512xf32, #tpu.memory_space<vmem>>, %arg3: memref<3x4xf32, #tpu.memory_space<smem>>, %arg4: memref<3x4xf32, #tpu.memory_space<smem>>, %arg5: memref<3x4xf32, #tpu.memory_space<smem>>, %arg6: memref<4xf32, #tpu.memory_space<smem>>, %arg7: memref<4xf32, #tpu.memory_space<smem>>, %arg8: memref<8x2x128xf32, #tpu.memory_space<vmem>>) attributes {dimension_semantics = [#tpu.dimension_semantics<arbitrary>, #tpu.dimension_semantics<parallel>], iteration_bounds = array<i64: 1, 1>, scalar_prefetch = 0 : i64, scratch_operands = 0 : i64, tpu.core_type = #tpu.core_type<tc>, window_params = [{transform_indices = @transform_0, window_bounds = array<i64: 2, 512>}, {transform_indices = @transform_1, window_bounds = array<i64: 3, 4>}, {transform_indices = @transform_2, window_bounds = array<i64: 3, 4>}, {transform_indices = @transform_3, window_bounds = array<i64: 3, 4>}, {transform_indices = @transform_4, window_bounds = array<i64: 4>}, {transform_indices = @transform_5, window_bounds = array<i64: 4>}, {transform_indices = @transform_6, window_bounds = array<i64: 8, 2, 128>}]} {
    %c128_i32 = arith.constant 128 : i32
    %0 = arith.muli %arg1, %c128_i32 : i32
    %c0_i32 = arith.constant 0 : i32
    %1 = arith.addi %0, %c0_i32 : i32
    %c0_i32_0 = arith.constant 0 : i32
    %2 = arith.addi %1, %c0_i32_0 : i32
    %3 = tpu.assume_multiple %2, 128 : i32
    %c256_i32 = arith.constant 256 : i32
    %4 = arith.addi %1, %c256_i32 : i32
    %5 = tpu.assume_multiple %4, 128 : i32
    %c0 = arith.constant 0 : index
    %6 = arith.index_cast %3 : i32 to index
    %7 = vector.load %arg2[%c0, %6] : memref<2x512xf32, #tpu.memory_space<vmem>>, vector<2x256xf32>
    %c0_1 = arith.constant 0 : index
    %8 = arith.index_cast %5 : i32 to index
    %9 = vector.load %arg2[%c0_1, %8] : memref<2x512xf32, #tpu.memory_space<vmem>>, vector<2x256xf32>
    %10 = arith.addf %7, %9 : vector<2x256xf32>
    %11 = vector.extract_strided_slice %7 {offsets = [0, 0], sizes = [2, 128], strides = [1, 1]} : vector<2x256xf32> to vector<2x128xf32>
    %12 = vector.extract_strided_slice %9 {offsets = [0, 0], sizes = [2, 128], strides = [1, 1]} : vector<2x256xf32> to vector<2x128xf32>
    %13 = vector.extract_strided_slice %10 {offsets = [0, 0], sizes = [2, 128], strides = [1, 1]} : vector<2x256xf32> to vector<2x128xf32>
    %c0_2 = arith.constant 0 : index
    %c0_3 = arith.constant 0 : index
    %14 = memref.load %arg3[%c0_2, %c0_3] : memref<3x4xf32, #tpu.memory_space<smem>>
    %15 = vector.broadcast %14 : f32 to vector<2x128xf32>
    %16 = arith.mulf %11, %15 : vector<2x128xf32>
    %c0_4 = arith.constant 0 : index
    %c0_5 = arith.constant 0 : index
    %17 = memref.load %arg4[%c0_4, %c0_5] : memref<3x4xf32, #tpu.memory_space<smem>>
    %18 = vector.broadcast %17 : f32 to vector<2x128xf32>
    %19 = arith.mulf %12, %18 : vector<2x128xf32>
    %c0_6 = arith.constant 0 : index
    %c0_7 = arith.constant 0 : index
    %20 = memref.load %arg5[%c0_6, %c0_7] : memref<3x4xf32, #tpu.memory_space<smem>>
    %21 = vector.broadcast %20 : f32 to vector<2x128xf32>
    %22 = arith.mulf %13, %21 : vector<2x128xf32>
    %c0_8 = arith.constant 0 : index
    %c1 = arith.constant 1 : index
    %23 = memref.load %arg3[%c0_8, %c1] : memref<3x4xf32, #tpu.memory_space<smem>>
    %24 = vector.broadcast %23 : f32 to vector<2x128xf32>
    %25 = arith.mulf %11, %24 : vector<2x128xf32>
    %c0_9 = arith.constant 0 : index
    %c1_10 = arith.constant 1 : index
    %26 = memref.load %arg4[%c0_9, %c1_10] : memref<3x4xf32, #tpu.memory_space<smem>>
    %27 = vector.broadcast %26 : f32 to vector<2x128xf32>
    %28 = arith.mulf %12, %27 : vector<2x128xf32>
    %c0_11 = arith.constant 0 : index
    %c1_12 = arith.constant 1 : index
    %29 = memref.load %arg5[%c0_11, %c1_12] : memref<3x4xf32, #tpu.memory_space<smem>>
    %30 = vector.broadcast %29 : f32 to vector<2x128xf32>
    %31 = arith.mulf %13, %30 : vector<2x128xf32>
    %c0_13 = arith.constant 0 : index
    %c2 = arith.constant 2 : index
    %32 = memref.load %arg3[%c0_13, %c2] : memref<3x4xf32, #tpu.memory_space<smem>>
    %33 = vector.broadcast %32 : f32 to vector<2x128xf32>
    %34 = arith.mulf %11, %33 : vector<2x128xf32>
    %c0_14 = arith.constant 0 : index
    %c2_15 = arith.constant 2 : index
    %35 = memref.load %arg4[%c0_14, %c2_15] : memref<3x4xf32, #tpu.memory_space<smem>>
    %36 = vector.broadcast %35 : f32 to vector<2x128xf32>
    %37 = arith.mulf %12, %36 : vector<2x128xf32>
    %c0_16 = arith.constant 0 : index
    %c2_17 = arith.constant 2 : index
    %38 = memref.load %arg5[%c0_16, %c2_17] : memref<3x4xf32, #tpu.memory_space<smem>>
    %39 = vector.broadcast %38 : f32 to vector<2x128xf32>
    %40 = arith.mulf %13, %39 : vector<2x128xf32>
    %c0_18 = arith.constant 0 : index
    %c3 = arith.constant 3 : index
    %41 = memref.load %arg3[%c0_18, %c3] : memref<3x4xf32, #tpu.memory_space<smem>>
    %42 = vector.broadcast %41 : f32 to vector<2x128xf32>
    %43 = arith.mulf %11, %42 : vector<2x128xf32>
    %c0_19 = arith.constant 0 : index
    %c3_20 = arith.constant 3 : index
    %44 = memref.load %arg4[%c0_19, %c3_20] : memref<3x4xf32, #tpu.memory_space<smem>>
    %45 = vector.broadcast %44 : f32 to vector<2x128xf32>
    %46 = arith.mulf %12, %45 : vector<2x128xf32>
    %c0_21 = arith.constant 0 : index
    %c3_22 = arith.constant 3 : index
    %47 = memref.load %arg5[%c0_21, %c3_22] : memref<3x4xf32, #tpu.memory_space<smem>>
    %48 = vector.broadcast %47 : f32 to vector<2x128xf32>
    %49 = arith.mulf %13, %48 : vector<2x128xf32>
    %50 = vector.extract_strided_slice %7 {offsets = [0, 1], sizes = [2, 128], strides = [1, 1]} : vector<2x256xf32> to vector<2x128xf32>
    %51 = vector.extract_strided_slice %9 {offsets = [0, 1], sizes = [2, 128], strides = [1, 1]} : vector<2x256xf32> to vector<2x128xf32>
    %52 = vector.extract_strided_slice %10 {offsets = [0, 1], sizes = [2, 128], strides = [1, 1]} : vector<2x256xf32> to vector<2x128xf32>
    %c1_23 = arith.constant 1 : index
    %c0_24 = arith.constant 0 : index
    %53 = memref.load %arg3[%c1_23, %c0_24] : memref<3x4xf32, #tpu.memory_space<smem>>
    %54 = vector.broadcast %53 : f32 to vector<2x128xf32>
    %55 = arith.mulf %50, %54 : vector<2x128xf32>
    %c1_25 = arith.constant 1 : index
    %c0_26 = arith.constant 0 : index
    %56 = memref.load %arg4[%c1_25, %c0_26] : memref<3x4xf32, #tpu.memory_space<smem>>
    %57 = vector.broadcast %56 : f32 to vector<2x128xf32>
    %58 = arith.mulf %51, %57 : vector<2x128xf32>
    %c1_27 = arith.constant 1 : index
    %c0_28 = arith.constant 0 : index
    %59 = memref.load %arg5[%c1_27, %c0_28] : memref<3x4xf32, #tpu.memory_space<smem>>
    %60 = vector.broadcast %59 : f32 to vector<2x128xf32>
    %61 = arith.mulf %52, %60 : vector<2x128xf32>
    %62 = arith.addf %16, %55 : vector<2x128xf32>
    %63 = arith.addf %19, %58 : vector<2x128xf32>
    %64 = arith.addf %22, %61 : vector<2x128xf32>
    %c1_29 = arith.constant 1 : index
    %c1_30 = arith.constant 1 : index
    %65 = memref.load %arg3[%c1_29, %c1_30] : memref<3x4xf32, #tpu.memory_space<smem>>
    %66 = vector.broadcast %65 : f32 to vector<2x128xf32>
    %67 = arith.mulf %50, %66 : vector<2x128xf32>
    %c1_31 = arith.constant 1 : index
    %c1_32 = arith.constant 1 : index
    %68 = memref.load %arg4[%c1_31, %c1_32] : memref<3x4xf32, #tpu.memory_space<smem>>
    %69 = vector.broadcast %68 : f32 to vector<2x128xf32>
    %70 = arith.mulf %51, %69 : vector<2x128xf32>
    %c1_33 = arith.constant 1 : index
    %c1_34 = arith.constant 1 : index
    %71 = memref.load %arg5[%c1_33, %c1_34] : memref<3x4xf32, #tpu.memory_space<smem>>
    %72 = vector.broadcast %71 : f32 to vector<2x128xf32>
    %73 = arith.mulf %52, %72 : vector<2x128xf32>
    %74 = arith.addf %25, %67 : vector<2x128xf32>
    %75 = arith.addf %28, %70 : vector<2x128xf32>
    %76 = arith.addf %31, %73 : vector<2x128xf32>
    %c1_35 = arith.constant 1 : index
    %c2_36 = arith.constant 2 : index
    %77 = memref.load %arg3[%c1_35, %c2_36] : memref<3x4xf32, #tpu.memory_space<smem>>
    %78 = vector.broadcast %77 : f32 to vector<2x128xf32>
    %79 = arith.mulf %50, %78 : vector<2x128xf32>
    %c1_37 = arith.constant 1 : index
    %c2_38 = arith.constant 2 : index
    %80 = memref.load %arg4[%c1_37, %c2_38] : memref<3x4xf32, #tpu.memory_space<smem>>
    %81 = vector.broadcast %80 : f32 to vector<2x128xf32>
    %82 = arith.mulf %51, %81 : vector<2x128xf32>
    %c1_39 = arith.constant 1 : index
    %c2_40 = arith.constant 2 : index
    %83 = memref.load %arg5[%c1_39, %c2_40] : memref<3x4xf32, #tpu.memory_space<smem>>
    %84 = vector.broadcast %83 : f32 to vector<2x128xf32>
    %85 = arith.mulf %52, %84 : vector<2x128xf32>
    %86 = arith.addf %34, %79 : vector<2x128xf32>
    %87 = arith.addf %37, %82 : vector<2x128xf32>
    %88 = arith.addf %40, %85 : vector<2x128xf32>
    %c1_41 = arith.constant 1 : index
    %c3_42 = arith.constant 3 : index
    %89 = memref.load %arg3[%c1_41, %c3_42] : memref<3x4xf32, #tpu.memory_space<smem>>
    %90 = vector.broadcast %89 : f32 to vector<2x128xf32>
    %91 = arith.mulf %50, %90 : vector<2x128xf32>
    %c1_43 = arith.constant 1 : index
    %c3_44 = arith.constant 3 : index
    %92 = memref.load %arg4[%c1_43, %c3_44] : memref<3x4xf32, #tpu.memory_space<smem>>
    %93 = vector.broadcast %92 : f32 to vector<2x128xf32>
    %94 = arith.mulf %51, %93 : vector<2x128xf32>
    %c1_45 = arith.constant 1 : index
    %c3_46 = arith.constant 3 : index
    %95 = memref.load %arg5[%c1_45, %c3_46] : memref<3x4xf32, #tpu.memory_space<smem>>
    %96 = vector.broadcast %95 : f32 to vector<2x128xf32>
    %97 = arith.mulf %52, %96 : vector<2x128xf32>
    %98 = arith.addf %43, %91 : vector<2x128xf32>
    %99 = arith.addf %46, %94 : vector<2x128xf32>
    %100 = arith.addf %49, %97 : vector<2x128xf32>
    %101 = vector.extract_strided_slice %7 {offsets = [0, 2], sizes = [2, 128], strides = [1, 1]} : vector<2x256xf32> to vector<2x128xf32>
    %102 = vector.extract_strided_slice %9 {offsets = [0, 2], sizes = [2, 128], strides = [1, 1]} : vector<2x256xf32> to vector<2x128xf32>
    %103 = vector.extract_strided_slice %10 {offsets = [0, 2], sizes = [2, 128], strides = [1, 1]} : vector<2x256xf32> to vector<2x128xf32>
    %c2_47 = arith.constant 2 : index
    %c0_48 = arith.constant 0 : index
    %104 = memref.load %arg3[%c2_47, %c0_48] : memref<3x4xf32, #tpu.memory_space<smem>>
    %105 = vector.broadcast %104 : f32 to vector<2x128xf32>
    %106 = arith.mulf %101, %105 : vector<2x128xf32>
    %c2_49 = arith.constant 2 : index
    %c0_50 = arith.constant 0 : index
    %107 = memref.load %arg4[%c2_49, %c0_50] : memref<3x4xf32, #tpu.memory_space<smem>>
    %108 = vector.broadcast %107 : f32 to vector<2x128xf32>
    %109 = arith.mulf %102, %108 : vector<2x128xf32>
    %c2_51 = arith.constant 2 : index
    %c0_52 = arith.constant 0 : index
    %110 = memref.load %arg5[%c2_51, %c0_52] : memref<3x4xf32, #tpu.memory_space<smem>>
    %111 = vector.broadcast %110 : f32 to vector<2x128xf32>
    %112 = arith.mulf %103, %111 : vector<2x128xf32>
    %113 = arith.addf %62, %106 : vector<2x128xf32>
    %114 = arith.addf %63, %109 : vector<2x128xf32>
    %115 = arith.addf %64, %112 : vector<2x128xf32>
    %c2_53 = arith.constant 2 : index
    %c1_54 = arith.constant 1 : index
    %116 = memref.load %arg3[%c2_53, %c1_54] : memref<3x4xf32, #tpu.memory_space<smem>>
    %117 = vector.broadcast %116 : f32 to vector<2x128xf32>
    %118 = arith.mulf %101, %117 : vector<2x128xf32>
    %c2_55 = arith.constant 2 : index
    %c1_56 = arith.constant 1 : index
    %119 = memref.load %arg4[%c2_55, %c1_56] : memref<3x4xf32, #tpu.memory_space<smem>>
    %120 = vector.broadcast %119 : f32 to vector<2x128xf32>
    %121 = arith.mulf %102, %120 : vector<2x128xf32>
    %c2_57 = arith.constant 2 : index
    %c1_58 = arith.constant 1 : index
    %122 = memref.load %arg5[%c2_57, %c1_58] : memref<3x4xf32, #tpu.memory_space<smem>>
    %123 = vector.broadcast %122 : f32 to vector<2x128xf32>
    %124 = arith.mulf %103, %123 : vector<2x128xf32>
    %125 = arith.addf %74, %118 : vector<2x128xf32>
    %126 = arith.addf %75, %121 : vector<2x128xf32>
    %127 = arith.addf %76, %124 : vector<2x128xf32>
    %c2_59 = arith.constant 2 : index
    %c2_60 = arith.constant 2 : index
    %128 = memref.load %arg3[%c2_59, %c2_60] : memref<3x4xf32, #tpu.memory_space<smem>>
    %129 = vector.broadcast %128 : f32 to vector<2x128xf32>
    %130 = arith.mulf %101, %129 : vector<2x128xf32>
    %c2_61 = arith.constant 2 : index
    %c2_62 = arith.constant 2 : index
    %131 = memref.load %arg4[%c2_61, %c2_62] : memref<3x4xf32, #tpu.memory_space<smem>>
    %132 = vector.broadcast %131 : f32 to vector<2x128xf32>
    %133 = arith.mulf %102, %132 : vector<2x128xf32>
    %c2_63 = arith.constant 2 : index
    %c2_64 = arith.constant 2 : index
    %134 = memref.load %arg5[%c2_63, %c2_64] : memref<3x4xf32, #tpu.memory_space<smem>>
    %135 = vector.broadcast %134 : f32 to vector<2x128xf32>
    %136 = arith.mulf %103, %135 : vector<2x128xf32>
    %137 = arith.addf %86, %130 : vector<2x128xf32>
    %138 = arith.addf %87, %133 : vector<2x128xf32>
    %139 = arith.addf %88, %136 : vector<2x128xf32>
    %c2_65 = arith.constant 2 : index
    %c3_66 = arith.constant 3 : index
    %140 = memref.load %arg3[%c2_65, %c3_66] : memref<3x4xf32, #tpu.memory_space<smem>>
    %141 = vector.broadcast %140 : f32 to vector<2x128xf32>
    %142 = arith.mulf %101, %141 : vector<2x128xf32>
    %c2_67 = arith.constant 2 : index
    %c3_68 = arith.constant 3 : index
    %143 = memref.load %arg4[%c2_67, %c3_68] : memref<3x4xf32, #tpu.memory_space<smem>>
    %144 = vector.broadcast %143 : f32 to vector<2x128xf32>
    %145 = arith.mulf %102, %144 : vector<2x128xf32>
    %c2_69 = arith.constant 2 : index
    %c3_70 = arith.constant 3 : index
    %146 = memref.load %arg5[%c2_69, %c3_70] : memref<3x4xf32, #tpu.memory_space<smem>>
    %147 = vector.broadcast %146 : f32 to vector<2x128xf32>
    %148 = arith.mulf %103, %147 : vector<2x128xf32>
    %149 = arith.addf %98, %142 : vector<2x128xf32>
    %150 = arith.addf %99, %145 : vector<2x128xf32>
    %151 = arith.addf %100, %148 : vector<2x128xf32>
    %152 = arith.subf %113, %114 : vector<2x128xf32>
    %c0_71 = arith.constant 0 : index
    %153 = memref.load %arg6[%c0_71] : memref<4xf32, #tpu.memory_space<smem>>
    %154 = vector.broadcast %153 : f32 to vector<2x128xf32>
    %155 = arith.addf %152, %154 : vector<2x128xf32>
    %156 = arith.subf %115, %113 : vector<2x128xf32>
    %157 = arith.subf %156, %114 : vector<2x128xf32>
    %c0_72 = arith.constant 0 : index
    %158 = memref.load %arg7[%c0_72] : memref<4xf32, #tpu.memory_space<smem>>
    %159 = vector.broadcast %158 : f32 to vector<2x128xf32>
    %160 = arith.addf %157, %159 : vector<2x128xf32>
    %c0_73 = arith.constant 0 : index
    %c0_74 = arith.constant 0 : index
    %c0_75 = arith.constant 0 : index
    %161 = vector.load %arg8[%c0_73, %c0_74, %c0_75] : memref<8x2x128xf32, #tpu.memory_space<vmem>>, vector<1x2x128xf32>
    %162 = vector.shape_cast %161 : vector<1x2x128xf32> to vector<2x128xf32>
    %163 = vector.shape_cast %155 : vector<2x128xf32> to vector<1x2x128xf32>
    tpu.vector_store %arg8[%c0_73, %c0_74, %c0_75], %163 {strides = array<i32>} : memref<8x2x128xf32, #tpu.memory_space<vmem>>, vector<1x2x128xf32>,
    %c4 = arith.constant 4 : index
    %c0_76 = arith.constant 0 : index
    %c0_77 = arith.constant 0 : index
    %164 = vector.load %arg8[%c4, %c0_76, %c0_77] : memref<8x2x128xf32, #tpu.memory_space<vmem>>, vector<1x2x128xf32>
    %165 = vector.shape_cast %164 : vector<1x2x128xf32> to vector<2x128xf32>
    %166 = vector.shape_cast %160 : vector<2x128xf32> to vector<1x2x128xf32>
    tpu.vector_store %arg8[%c4, %c0_76, %c0_77], %166 {strides = array<i32>} : memref<8x2x128xf32, #tpu.memory_space<vmem>>, vector<1x2x128xf32>,
    %167 = arith.subf %125, %126 : vector<2x128xf32>
    %c1_78 = arith.constant 1 : index
    %168 = memref.load %arg6[%c1_78] : memref<4xf32, #tpu.memory_space<smem>>
    %169 = vector.broadcast %168 : f32 to vector<2x128xf32>
    %170 = arith.addf %167, %169 : vector<2x128xf32>
    %171 = arith.subf %127, %125 : vector<2x128xf32>
    %172 = arith.subf %171, %126 : vector<2x128xf32>
    %c1_79 = arith.constant 1 : index
    %173 = memref.load %arg7[%c1_79] : memref<4xf32, #tpu.memory_space<smem>>
    %174 = vector.broadcast %173 : f32 to vector<2x128xf32>
    %175 = arith.addf %172, %174 : vector<2x128xf32>
    %c1_80 = arith.constant 1 : index
    %c0_81 = arith.constant 0 : index
    %c0_82 = arith.constant 0 : index
    %176 = vector.load %arg8[%c1_80, %c0_81, %c0_82] : memref<8x2x128xf32, #tpu.memory_space<vmem>>, vector<1x2x128xf32>
    %177 = vector.shape_cast %176 : vector<1x2x128xf32> to vector<2x128xf32>
    %178 = vector.shape_cast %170 : vector<2x128xf32> to vector<1x2x128xf32>
    tpu.vector_store %arg8[%c1_80, %c0_81, %c0_82], %178 {strides = array<i32>} : memref<8x2x128xf32, #tpu.memory_space<vmem>>, vector<1x2x128xf32>,
    %c5 = arith.constant 5 : index
    %c0_83 = arith.constant 0 : index
    %c0_84 = arith.constant 0 : index
    %179 = vector.load %arg8[%c5, %c0_83, %c0_84] : memref<8x2x128xf32, #tpu.memory_space<vmem>>, vector<1x2x128xf32>
    %180 = vector.shape_cast %179 : vector<1x2x128xf32> to vector<2x128xf32>
    %181 = vector.shape_cast %175 : vector<2x128xf32> to vector<1x2x128xf32>
    tpu.vector_store %arg8[%c5, %c0_83, %c0_84], %181 {strides = array<i32>} : memref<8x2x128xf32, #tpu.memory_space<vmem>>, vector<1x2x128xf32>,
    %182 = arith.subf %137, %138 : vector<2x128xf32>
    %c2_85 = arith.constant 2 : index
    %183 = memref.load %arg6[%c2_85] : memref<4xf32, #tpu.memory_space<smem>>
    %184 = vector.broadcast %183 : f32 to vector<2x128xf32>
    %185 = arith.addf %182, %184 : vector<2x128xf32>
    %186 = arith.subf %139, %137 : vector<2x128xf32>
    %187 = arith.subf %186, %138 : vector<2x128xf32>
    %c2_86 = arith.constant 2 : index
    %188 = memref.load %arg7[%c2_86] : memref<4xf32, #tpu.memory_space<smem>>
    %189 = vector.broadcast %188 : f32 to vector<2x128xf32>
    %190 = arith.addf %187, %189 : vector<2x128xf32>
    %c2_87 = arith.constant 2 : index
    %c0_88 = arith.constant 0 : index
    %c0_89 = arith.constant 0 : index
    %191 = vector.load %arg8[%c2_87, %c0_88, %c0_89] : memref<8x2x128xf32, #tpu.memory_space<vmem>>, vector<1x2x128xf32>
    %192 = vector.shape_cast %191 : vector<1x2x128xf32> to vector<2x128xf32>
    %193 = vector.shape_cast %185 : vector<2x128xf32> to vector<1x2x128xf32>
    tpu.vector_store %arg8[%c2_87, %c0_88, %c0_89], %193 {strides = array<i32>} : memref<8x2x128xf32, #tpu.memory_space<vmem>>, vector<1x2x128xf32>,
    %c6 = arith.constant 6 : index
    %c0_90 = arith.constant 0 : index
    %c0_91 = arith.constant 0 : index
    %194 = vector.load %arg8[%c6, %c0_90, %c0_91] : memref<8x2x128xf32, #tpu.memory_space<vmem>>, vector<1x2x128xf32>
    %195 = vector.shape_cast %194 : vector<1x2x128xf32> to vector<2x128xf32>
    %196 = vector.shape_cast %190 : vector<2x128xf32> to vector<1x2x128xf32>
    tpu.vector_store %arg8[%c6, %c0_90, %c0_91], %196 {strides = array<i32>} : memref<8x2x128xf32, #tpu.memory_space<vmem>>, vector<1x2x128xf32>,
    %197 = arith.subf %149, %150 : vector<2x128xf32>
    %c3_92 = arith.constant 3 : index
    %198 = memref.load %arg6[%c3_92] : memref<4xf32, #tpu.memory_space<smem>>
    %199 = vector.broadcast %198 : f32 to vector<2x128xf32>
    %200 = arith.addf %197, %199 : vector<2x128xf32>
    %201 = arith.subf %151, %149 : vector<2x128xf32>
    %202 = arith.subf %201, %150 : vector<2x128xf32>
    %c3_93 = arith.constant 3 : index
    %203 = memref.load %arg7[%c3_93] : memref<4xf32, #tpu.memory_space<smem>>
    %204 = vector.broadcast %203 : f32 to vector<2x128xf32>
    %205 = arith.addf %202, %204 : vector<2x128xf32>
    %c3_94 = arith.constant 3 : index
    %c0_95 = arith.constant 0 : index
    %c0_96 = arith.constant 0 : index
    %206 = vector.load %arg8[%c3_94, %c0_95, %c0_96] : memref<8x2x128xf32, #tpu.memory_space<vmem>>, vector<1x2x128xf32>
    %207 = vector.shape_cast %206 : vector<1x2x128xf32> to vector<2x128xf32>
    %208 = vector.shape_cast %200 : vector<2x128xf32> to vector<1x2x128xf32>
    tpu.vector_store %arg8[%c3_94, %c0_95, %c0_96], %208 {strides = array<i32>} : memref<8x2x128xf32, #tpu.memory_space<vmem>>, vector<1x2x128xf32>,
    %c7 = arith.constant 7 : index
    %c0_97 = arith.constant 0 : index
    %c0_98 = arith.constant 0 : index
    %209 = vector.load %arg8[%c7, %c0_97, %c0_98] : memref<8x2x128xf32, #tpu.memory_space<vmem>>, vector<1x2x128xf32>
    %210 = vector.shape_cast %209 : vector<1x2x128xf32> to vector<2x128xf32>
    %211 = vector.shape_cast %205 : vector<2x128xf32> to vector<1x2x128xf32>
    tpu.vector_store %arg8[%c7, %c0_97, %c0_98], %211 {strides = array<i32>} : memref<8x2x128xf32, #tpu.memory_space<vmem>>, vector<1x2x128xf32>,
    return
  }
  func.func @transform_0(%arg0: i32, %arg1: i32) -> (i32, i32) {
    %c0_i32 = arith.constant 0 : i32
    %c0_i32_0 = arith.constant 0 : i32
    return %arg0, %c0_i32 : i32, i32
  }
  func.func @transform_1(%arg0: i32, %arg1: i32) -> (i32, i32) {
    %c0_i32 = arith.constant 0 : i32
    %c0_i32_0 = arith.constant 0 : i32
    %c0_i32_1 = arith.constant 0 : i32
    return %c0_i32, %c0_i32_0 : i32, i32
  }
  func.func @transform_2(%arg0: i32, %arg1: i32) -> (i32, i32) {
    %c0_i32 = arith.constant 0 : i32
    %c0_i32_0 = arith.constant 0 : i32
    %c0_i32_1 = arith.constant 0 : i32
    return %c0_i32, %c0_i32_0 : i32, i32
  }
  func.func @transform_3(%arg0: i32, %arg1: i32) -> (i32, i32) {
    %c0_i32 = arith.constant 0 : i32
    %c0_i32_0 = arith.constant 0 : i32
    %c0_i32_1 = arith.constant 0 : i32
    return %c0_i32, %c0_i32_0 : i32, i32
  }
  func.func @transform_4(%arg0: i32, %arg1: i32) -> i32 {
    %c0_i32 = arith.constant 0 : i32
    %c0_i32_0 = arith.constant 0 : i32
    return %c0_i32 : i32
  }
  func.func @transform_5(%arg0: i32, %arg1: i32) -> i32 {
    %c0_i32 = arith.constant 0 : i32
    %c0_i32_0 = arith.constant 0 : i32
    return %c0_i32 : i32
  }
  func.func @transform_6(%arg0: i32, %arg1: i32) -> (i32, i32, i32) {
    %c0_i32 = arith.constant 0 : i32
    %c0_i32_0 = arith.constant 0 : i32
    return %c0_i32, %arg0, %arg1 : i32, i32, i32
  }
}

</mosaic_0001>

<bundles_post_ra>
// kernel: tpu_custom_call.1
= control target key start
LH: loop header
LB: loop body
LE: loop exit
PB: predicated region body
PF: predicated region fallthrough
CT: control target
= control target key end

     0   :  { %11 = vsyncpa [#allocation3], 0  ;;  %s869_s0 = inlined_call_operand.hbm [shape: f32[2,512], index: 0, kind: input, shape index: {}]   ;;  %s870_s1 = inlined_call_operand.hbm [shape: f32[3,4], index: 1, kind: input, shape index: {}]   ;;  %s871_s2 = inlined_call_operand.hbm [shape: f32[3,4], index: 2, kind: input, shape index: {}]   ;;  %s872_s3 = inlined_call_operand.vmem [shape: f32[3,4], index: 3, kind: input, shape index: {}]   ;;  %s873_s4 = inlined_call_operand.vmem [shape: f32[4], index: 4, kind: input, shape index: {}]   ;;  %s874_s5 = inlined_call_operand.vmem [shape: f32[4], index: 5, kind: input, shape index: {}]   ;;  %s875_s6 = inlined_call_operand.hbm [shape: f32[8,2,128], index: 6, kind: output, shape index: {}]  }
   0x1   :  { %12 = vsyncpa [#allocation5], 0 }
   0x2   :  { %13 = vsyncpa [#allocation9], 0 }
   0x3   :  { %14 = vsyncpa [#allocation6], 0 }
   0x4   :  { %15 = vsyncpa [#allocation12], 0  ;;  %s59_s23 = sshll.u32 %s873_s4, 4  ;;  %s60_s23 = int_to_ptr.vmem [resolvable:$true] %s59_s23 }
   0x5   :  { %16 = vsyncpa [#allocation4], 0  ;;  %s509_s24 = scalar_lea.vmem %s60_s23, 16  ;;  %p514_p1 = scmp.lt.s32.totalorder %s60_s23, %s60_s23 }
   0x6   :  { %p510_p0 = scmp.ne.s32.totalorder %s60_s23, %s509_s24  ;;  %p515_p2 = scmp.lt.s32.totalorder %s509_s24, %s509_s24 }
   0x8   :  { %p516_p3 = por %p515_p2, %p514_p1 }
   0xa   :  { %p517_p4 = pnand %p516_p3, %p510_p0 }
   0xc   :  { %520 = shalt.err (!%p517_p4)
}
   0xd   :  { %s613_s25 = smov [#allocation11]   ;;  %s614_s26 = smov [#allocation2]  }
   0xe   :  { %62 = dma.vmem_to_smem %s60_s23, 16, %s613_s25, [#allocation12]  }
   0xf   :  { %s23_s27 = sshll.u32 %s614_s26, 4  ;;  %s24_s27 = int_to_ptr.vmem [resolvable:$true] %s23_s27 }
  0x10   :  { %s529_s28 = scalar_lea.vmem %s24_s27, 128  ;;  %p534_p6 = scmp.lt.s32.totalorder %s24_s27, %s24_s27 }
  0x11   :  { %p530_p5 = scmp.ne.s32.totalorder %s24_s27, %s529_s28  ;;  %p535_p7 = scmp.lt.s32.totalorder %s529_s28, %s529_s28 }
  0x13   :  { %p536_p8 = por %p535_p7, %p534_p6 }
  0x15   :  { %p537_p9 = pnand %p536_p8, %p530_p5 }
  0x17   :  { %540 = shalt.err (!%p537_p9)
}
  0x18   :  { %26 = dma.hbm_to_vmem [thread:$0]  %s869_s0, 128, %s24_s27, [#allocation3]  }
  0x19   :  { %s615_s30 = smov [#allocation7]   ;;  %s616_s9 = smov [#allocation8]  }
  0x1a   :  { %34 = dma.hbm_to_smem %s870_s1, 64, %s615_s30, [#allocation5]  }
  0x1b   :  { %42 = dma.hbm_to_smem %s871_s2, 64, %s616_s9, [#allocation9]  }
  0x1c   :  { %s49_s14 = sshll.u32 %s872_s3, 4  ;;  %s69_s17 = sshll.u32 %s874_s5, 4  ;;  %s50_s14 = int_to_ptr.vmem [resolvable:$true] %s49_s14  ;;  %s70_s17 = int_to_ptr.vmem [resolvable:$true] %s69_s17 }
  0x1d   :  { %s557_s0 = scalar_lea.vmem %s50_s14, 64  ;;  %p562_p11 = scmp.lt.s32.totalorder %s50_s14, %s50_s14 }
  0x1e   :  { %p558_p10 = scmp.ne.s32.totalorder %s50_s14, %s557_s0  ;;  %p563_p12 = scmp.lt.s32.totalorder %s557_s0, %s557_s0 }
  0x20   :  { %p564_p13 = por %p563_p12, %p562_p11 }
  0x22   :  { %p565_p0 = pnand %p564_p13, %p558_p10 }
  0x24   :  { %568 = shalt.err (!%p565_p0)
}
  0x25   :  { %s617_s1 = smov [#allocation10]   ;;  %s569_s2 = scalar_lea.vmem %s70_s17, 16 }
  0x26   :  { %52 = dma.vmem_to_smem %s50_s14, 64, %s617_s1, [#allocation6]  }
  0x27   :  { %p570_p1 = scmp.ne.s32.totalorder %s70_s17, %s569_s2  ;;  %p574_p2 = scmp.lt.s32.totalorder %s70_s17, %s70_s17 }
  0x28   :  { %p575_p3 = scmp.lt.s32.totalorder %s569_s2, %s569_s2 }
  0x2a   :  { %p576_p4 = por %p575_p3, %p574_p2 }
  0x2c   :  { %p577_p5 = pnand %p576_p4, %p570_p1 }
  0x2e   :  { %580 = shalt.err (!%p577_p5)
}
  0x2f   :  { %s618_s3 = smov [#allocation13]  }
  0x30   :  { %72 = dma.vmem_to_smem %s70_s17, 16, %s618_s3, [#allocation12]  }
  0x31   :  { %601 = dma.done.wait [#allocation3], 128  }
  0x32   :  { %602 = vsyncadd [#allocation3], 4294967168 }
  0x33   :  { %603 = dma.done.wait [#allocation5], 64  }
  0x34   :  { %604 = vsyncadd [#allocation5], 4294967232 }
  0x35   :  { %605 = dma.done.wait [#allocation9], 64  }
  0x36   :  { %606 = vsyncadd [#allocation9], 4294967232 }
  0x37   :  { %607 = dma.done.wait [#allocation6], 64  }
  0x38   :  { %608 = vsyncadd [#allocation6], 4294967232 }
  0x39   :  { %609 = dma.done.wait [#allocation12], 32  }
  0x3a   :  { %610 = vsyncadd [#allocation12], 4294967264 }
  0x3b   :  { %91 = sfence }
  0x3c   :  { %s471_s5 = sld [smem:[#allocation7 + $0x81]]  ;;  %v677_v0 = vld [vmem:[#allocation2 + $0x4] sm:$0xf]  ;;  %v679_v1 = vld [vmem:[#allocation2] sm:$0xf]  ;;  %s619_s25 = smov 127  }
  0x3d   :  { %s468_s18 = sld [smem:[#allocation7 + $0x80]]  ;;  %v683_v2 = vadd.f32 %v677_v0, %v679_v1  ;;  %s620_s13 = smov 126   ;;  %vm154_vm0 = vcmask 1039360   ;;  %vm275_vm1 = vcmask 1031168  }
  0x3e   :  { %s473_s19 = sld [smem:[#allocation10 + $0x81]] }
  0x3f   :  { %s470_s20 = sld [smem:[#allocation10 + $0x80]] }
  0x40   :  { %s476_s21 = sld [smem:[#allocation10 + $0x82]] }
  0x41   :  { %s474_s22 = sld [smem:[#allocation7 + $0x82]] }
  0x42   :  { %v173_v3 = vstv %s471_s5  ;;  %s479_s23 = sld [smem:[#allocation10 + $0x83]] }
  0x43   :  { %v174_v4 = vmul.f32 %v173_v3, %v679_v1  ;;  %v142_v5 = vstv %s468_s18  ;;  %s477_s24 = sld [smem:[#allocation7 + $0x83]] }
  0x44   :  { %v143_v6 = vmul.f32 %v142_v5, %v679_v1  ;;  %v179_v7 = vstv %s473_s19  ;;  %s472_s26 = sld [smem:[#allocation8 + $0x81]] }
  0x45   :  { %182 = vrot.lane.b32.xlu1 %v174_v4, %s619_s25  ;;  %v180_v8 = vmul.f32 %v179_v7, %v683_v2  ;;  %v148_v9 = vstv %s470_s20  ;;  %s469_s27 = sld [smem:[#allocation8 + $0x80]] }
  0x46   :  { %151 = vrot.lane.b32.xlu0 %v143_v6, %s619_s25  ;;  %v149_v10 = vmul.f32 %v148_v9, %v683_v2  ;;  %v209_v11 = vstv %s476_s21  ;;  %s478_s28 = sld [smem:[#allocation8 + $0x83]] }
  0x47   :  { %v203_v12 = vstv %s474_s22  ;;  %v210_v13 = vmul.f32 %v209_v11, %v683_v2  ;;  %s475_s4 = sld [smem:[#allocation8 + $0x82]] }
  0x48   :  { %v204_v14 = vmul.f32 %v203_v12, %v679_v1  ;;  %v239_v15 = vstv %s479_s23  ;;  %s482_s29 = sld [smem:[#allocation10 + $0x100]] }
  0x49   :  { %196 = vrot.lane.b32.xlu1 %v180_v8, %s619_s25  ;;  %v233_v16 = vstv %s477_s24  ;;  %v240_v17 = vmul.f32 %v239_v15, %v683_v2  ;;  %s480_s30 = sld [smem:[#allocation7 + $0x100]] }
  0x4a   :  { %166 = vrot.lane.b32.xlu0 %v149_v10, %s619_s25  ;;  %v234_v18 = vmul.f32 %v233_v16, %v679_v1  ;;  %v176_v19 = vstv %s472_s26  ;;  %s485_s7 = sld [smem:[#allocation10 + $0x101]] }
  0x4b   :  { %v145_v20 = vstv %s469_s27  ;;  %v177_v21 = vmul.f32 %v176_v19, %v677_v0  ;;  %s483_s8 = sld [smem:[#allocation7 + $0x101]] }
  0x4c   :  { %v146_v22 = vmul.f32 %v145_v20, %v677_v0  ;;  %v236_v23 = vstv %s478_s28  ;;  %s488_s9 = sld [smem:[#allocation10 + $0x102]] }
  0x4d   :  { %226 = vrot.lane.b32.xlu1 %v210_v13, %s619_s25  ;;  %v206_v24 = vstv %s475_s4  ;;  %v237_v25 = vmul.f32 %v236_v23, %v677_v0  ;;  %s486_s10 = sld [smem:[#allocation7 + $0x102]] }
  0x4e   :  { %212 = vrot.lane.b32.xlu0 %v204_v14, %s619_s25  ;;  %v207_v26 = vmul.f32 %v206_v24, %v677_v0  ;;  %v269_v27 = vstv %s482_s29  ;;  %s491_s11 = sld [smem:[#allocation10 + $0x103]] }
  0x4f   :  { %v263_v28 = vstv %s480_s30  ;;  %v270_v29 = vmul.f32 %v269_v27, %v683_v2  ;;  %s489_s12 = sld [smem:[#allocation7 + $0x103]] }
  0x50   :  { %v264_v30 = vmul.f32 %v263_v28, %v679_v1  ;;  %v300_v31 = vstv %s485_s7  ;;  %s484_s14 = sld [smem:[#allocation8 + $0x101]] }
  0x51   :  { %256 = vrot.lane.b32.xlu1 %v240_v17, %s619_s25  ;;  %v294_v32 = vstv %s483_s8  ;;  %v301_v33 = vmul.f32 %v300_v31, %v683_v2  ;;  %s481_s15 = sld [smem:[#allocation8 + $0x100]]  ;;  %s621_s8 = smov [#allocation14]  }
  0x52   :  { %242 = vrot.lane.b32.xlu0 %v234_v18, %s619_s25  ;;  %v295_v34 = vmul.f32 %v294_v32, %v679_v1  ;;  %v330_v35 = vstv %s488_s9  ;;  %s490_s16 = sld [smem:[#allocation8 + $0x103]]  ;;  %s439_s9 = sshll.u32 %s621_s8, 4  ;;  %s440_s9 = int_to_ptr.vmem [resolvable:$true] %s439_s9 }
  0x53   :  { %v324_v36 = vstv %s486_s10  ;;  %v331_v37 = vmul.f32 %v330_v35, %v683_v2  ;;  %s487_s17 = sld [smem:[#allocation8 + $0x102]]  ;;  %s581_s10 = scalar_lea.vmem %s440_s9, 256 }
  0x54   :  { %v325_v38 = vmul.f32 %v324_v36, %v679_v1  ;;  %v360_v39 = vstv %s491_s11  ;;  %s459_s0 = sld [smem:[#allocation7 + $0x1]]  ;;  %p582_p6 = scmp.ne.s32.totalorder %s440_s9, %s581_s10 }
  0x55   :  { %189 = vrot.lane.b32.xlu1 %v177_v21, %s619_s25  ;;  %v354_v40 = vstv %s489_s12  ;;  %v361_v41 = vmul.f32 %v360_v39, %v683_v2  ;;  %s111_s1 = sld [smem:[#allocation10]]  ;;  %p586_p7 = scmp.lt.s32.totalorder %s440_s9, %s440_s9 }
  0x56   :  { %159 = vrot.lane.b32.xlu0 %v146_v22, %s619_s25  ;;  %v355_v42 = vmul.f32 %v354_v40, %v679_v1  ;;  %v297_v43 = vstv %s484_s14  ;;  %s105_s2 = sld [smem:[#allocation7]]  ;;  %p587_p8 = scmp.lt.s32.totalorder %s581_s10, %s581_s10 }
  0x57   :  { %v266_v44 = vstv %s481_s15  ;;  %v298_v45 = vmul.f32 %v297_v43, %v677_v0  ;;  %s461_s3 = sld [smem:[#allocation10 + $0x1]] }
  0x58   :  { %v267_v46 = vmul.f32 %v266_v44, %v677_v0  ;;  %v357_v47 = vstv %s490_s16  ;;  %s464_s5 = sld [smem:[#allocation10 + $0x2]]  ;;  %p588_p9 = por %p587_p8, %p586_p7 }
  0x59   :  { %249 = vrot.lane.b32.xlu1 %v237_v25, %s619_s25  ;;  %v327_v48 = vstv %s487_s17  ;;  %v358_v49 = vmul.f32 %v357_v47, %v677_v0  ;;  %s741_s18 = sld [smem:[#allocation7 + $0x2]] }
  0x5a   :  { %219 = vrot.lane.b32.xlu0 %v207_v26, %s619_s25  ;;  %v328_v50 = vmul.f32 %v327_v48, %v677_v0  ;;  %s745_s19 = sld [smem:[#allocation10 + $0x3]]  ;;  %v115_v5 = vstv %s459_s0  ;;  %p589_p10 = pnand %p588_p9, %p582_p6 }
  0x5b   :  { %v112_v61 = vstv %s111_s1  ;;  %s749_s20 = sld [smem:[#allocation7 + $0x3]]  ;;  %v116_v14 = vmul.f32 %v115_v5, %v679_v1 }
  0x5c   :  { %v106_v63 = vstv %s105_s2  ;;  %v113_v9 = vmul.f32 %v112_v61, %v683_v2  ;;  %s758_s21 = sld [smem:[#allocation8 + $0x1]] }
  0x5d   :  { %287 = vrot.lane.b32.xlu1 %v270_v29, %s620_s13  ;;  %v121_v8 = vstv %s461_s3  ;;  %v107_v11 = vmul.f32 %v106_v63, %v679_v1  ;;  %s763_s22 = sld [smem:[#allocation8]] }
  0x5e   :  { %272 = vrot.lane.b32.xlu0 %v264_v30, %s620_s13  ;;  %v130_v10 = vstv %s464_s5  ;;  %v122_v17 = vmul.f32 %v121_v8, %v683_v2  ;;  %s775_s23 = sld [smem:[#allocation8 + $0x3]] }
  0x5f   :  { %v131_v18 = vmul.f32 %v130_v10, %v683_v2  ;;  %v124_v19 = vstv %s741_s18  ;;  %s781_s24 = sld [smem:[#allocation8 + $0x2]] }
  0x60   :  { %v125_v30 = vmul.f32 %v124_v19, %v679_v1  ;;  %v139_v31 = vstv %s745_s19  ;;  %s798_s25 = sld [smem:[#allocation11 + $0x1]] }
  0x61   :  { %317 = vrot.lane.b32.xlu1 %v301_v33, %s620_s13  ;;  %v133_v36 = vstv %s749_s20  ;;  %v140_v48 = vmul.f32 %v139_v31, %v683_v2  ;;  %s802_s26 = sld [smem:[#allocation13 + $0x1]] }
  0x62   :  { %303 = vrot.lane.b32.xlu0 %v295_v34, %s620_s13  ;;  %s810_s27 = sld [smem:[#allocation11]] }
  0x63   :  { %s817_s28 = sld [smem:[#allocation13]] }
  0x64   :  { %s823_s4 = sld [smem:[#allocation11 + $0x3]] }
  0x65   :  { %347 = vrot.lane.b32.xlu1 %v331_v37, %s620_s13  ;;  %v127_v19 = vstv %s781_s24  ;;  %s836_s29 = sld [smem:[#allocation13 + $0x3]] }
  0x66   :  { %333 = vrot.lane.b32.xlu0 %v325_v38, %s620_s13  ;;  %s840_s30 = sld [smem:[#allocation11 + $0x2]] }
  0x67   :  { %s844_s7 = sld [smem:[#allocation13 + $0x2]] }
  0x69   :  { %377 = vrot.lane.b32.xlu1 %v361_v41, %s620_s13 }
  0x6a   :  { %363 = vrot.lane.b32.xlu0 %v355_v42, %s620_s13 }
  0x6d   :  { %310 = vrot.lane.b32.xlu1 %v298_v45, %s620_s13 }
  0x6e   :  { %280 = vrot.lane.b32.xlu0 %v267_v46, %s620_s13 }
  0x71   :  { %370 = vrot.lane.b32.xlu1 %v358_v49, %s620_s13  ;;  %v134_v49 = vmul.f32 %v133_v36, %v679_v1  ;;  %v402_v36 = vstv %s802_s26 }
  0x72   :  { %340 = vrot.lane.b32.xlu0 %v328_v50, %s620_s13 }
  0xb7   :  { %v183_v51 = vpop.permute.xlu1 %182 }
  0xb8   :  { %v152_v52 = vpop.permute.xlu0 %151  ;;  %v184_v7 = vrot.slane %v183_v51, 2 }
  0xb9   :  { %v153_v3 = vrot.slane %v152_v52, 2 }
  0xba   :  { %v185_v22 = vsel %vm154_vm0, %v183_v51, %v184_v7 }
  0xbb   :  { %v197_v53 = vpop.permute.xlu1 %196  ;;  %v155_v15 = vsel %vm154_vm0, %v152_v52, %v153_v3  ;;  %v187_v35 = vadd.f32 %v185_v22, %v116_v14 }
  0xbc   :  { %v167_v54 = vpop.permute.xlu0 %166  ;;  %v198_v12 = vrot.slane %v197_v53, 2  ;;  %v157_v26 = vadd.f32 %v155_v15, %v107_v11 }
  0xbd   :  { %v168_v62 = vrot.slane %v167_v54, 2 }
  0xbe   :  { %v199_v27 = vsel %vm154_vm0, %v197_v53, %v198_v12  ;;  %v118_v53 = vstv %s758_s21 }
  0xbf   :  { %v227_v55 = vpop.permute.xlu1 %226  ;;  %v169_v13 = vsel %vm154_vm0, %v167_v54, %v168_v62  ;;  %v201_v40 = vadd.f32 %v199_v27, %v122_v17  ;;  %v109_v54 = vstv %s763_s22 }
  0xc0   :  { %v733_v56 = vpop.permute.xlu0 %212  ;;  %v171_v23 = vadd.f32 %v169_v13, %v113_v9  ;;  %v228_v24 = vrot.slane %v227_v55, 2  ;;  %v119_v9 = vmul.f32 %v118_v53, %v677_v0  ;;  %v136_v13 = vstv %s775_s23 }
  0xc1   :  { %v214_v28 = vrot.slane %v733_v56, 2 }
  0xc2   :  { %v229_v41 = vsel %vm154_vm0, %v227_v55, %v228_v24 }
  0xc3   :  { %v735_v57 = vpop.permute.xlu1 %256  ;;  %v215_v44 = vsel %vm154_vm0, %v733_v56, %v214_v28  ;;  %v231_v62 = vadd.f32 %v229_v41, %v131_v18 }
  0xc4   :  { %v737_v58 = vpop.permute.xlu0 %242  ;;  %v258_v42 = vrot.slane %v735_v57, 2  ;;  %v217_v63 = vadd.f32 %v215_v44, %v125_v30  ;;  %v128_v30 = vmul.f32 %v127_v19, %v677_v0  ;;  %v385_v44 = vstv %s810_s27 }
  0xc5   :  { %v244_v45 = vrot.slane %v737_v58, 2 }
  0xc6   :  { %v259_v2 = vsel %vm154_vm0, %v735_v57, %v258_v42 }
  0xc7   :  { %v739_v59 = vpop.permute.xlu1 %189  ;;  %v245_v3 = vsel %vm154_vm0, %v737_v58, %v244_v45  ;;  %v110_v58 = vmul.f32 %v109_v54, %v677_v0  ;;  %v261_v17 = vadd.f32 %v259_v2, %v140_v48  ;;  %v390_v48 = vstv %s817_s28 }
  0xc8   :  { %v743_v60 = vpop.permute.xlu0 %159  ;;  %v191_v5 = vrot.slane %v739_v59, 2  ;;  %v247_v18 = vadd.f32 %v245_v3, %v134_v49 }
  0xc9   :  { %v161_v57 = vrot.slane %v743_v60, 2 }
  0xcb   :  { %v747_v4 = vpop.permute.xlu1 %249 }
  0xcc   :  { %v751_v6 = vpop.permute.xlu0 %219  ;;  %v251_v22 = vrot.slane %v747_v4, 2 }
  0xcf   :  { %v288_v16 = vpop.permute.xlu1 %287 }
  0xd0   :  { %v289_v20 = vrot.slane %v288_v16, 2  ;;  %v273_v21 = vpop.permute.xlu0 %272 }
  0xd1   :  { %v274_v25 = vrot.slane %v273_v21, 2 }
  0xd2   :  { %v290_v29 = vsel %vm275_vm1, %v288_v16, %v289_v20 }
  0xd3   :  { %v771_v32 = vadd.f32 %v290_v29, %v171_v23  ;;  %v276_v33 = vsel %vm275_vm1, %v273_v21, %v274_v25  ;;  %v318_v34 = vpop.permute.xlu1 %317  ;;  %v192_v21 = vsel %vm154_vm0, %v739_v59, %v191_v5  ;;  %v162_v25 = vsel %vm154_vm0, %v743_v60, %v161_v57 }
  0xd4   :  { %v777_v37 = vadd.f32 %v276_v33, %v157_v26  ;;  %v319_v38 = vrot.slane %v318_v34, 2  ;;  %v304_v39 = vpop.permute.xlu0 %303  ;;  %v221_v26 = vrot.slane %v751_v6, 2  ;;  %v137_v59 = vmul.f32 %v136_v13, %v677_v0 }
  0xd5   :  { %v305_v43 = vrot.slane %v304_v39, 2  ;;  %v194_v60 = vadd.f32 %v192_v21, %v119_v9 }
  0xd6   :  { %v387_v46 = vsub.f32 %v771_v32, %v777_v37  ;;  %v320_v47 = vsel %vm275_vm1, %v318_v34, %v319_v38  ;;  %v222_v42 = vsel %vm154_vm0, %v751_v6, %v221_v26 }
  0xd7   :  { %v791_v50 = vadd.f32 %v320_v47, %v201_v40  ;;  %v306_v51 = vsel %vm275_vm1, %v304_v39, %v305_v43  ;;  %v348_v52 = vpop.permute.xlu1 %347  ;;  %v164_v39 = vadd.f32 %v162_v25, %v110_v58  ;;  %v252_v40 = vsel %vm154_vm0, %v747_v4, %v251_v22 }
  0xd8   :  { %v796_v55 = vadd.f32 %v306_v51, %v187_v35  ;;  %v349_v56 = vrot.slane %v348_v52, 2  ;;  %v334_v61 = vpop.permute.xlu0 %333  ;;  %v397_v35 = vstv %s798_s25  ;;  %v254_v53 = vadd.f32 %v252_v40, %v137_v59 }
  0xd9   :  { %v335_v1 = vrot.slane %v334_v61, 2 }
  0xda   :  { %v399_v7 = vsub.f32 %v791_v50, %v796_v55  ;;  %v350_v8 = vsel %vm275_vm1, %v348_v52, %v349_v56  ;;  %v423_v50 = vstv %s823_s4 }
  0xdb   :  { %v814_v10 = vadd.f32 %v350_v8, %v231_v62  ;;  %v336_v11 = vsel %vm275_vm1, %v334_v61, %v335_v1  ;;  %v378_v12 = vpop.permute.xlu1 %377  ;;  %v224_v61 = vadd.f32 %v222_v42, %v128_v30 }
  0xdc   :  { %v821_v14 = vadd.f32 %v336_v11, %v217_v63  ;;  %v379_v15 = vrot.slane %v378_v12, 2  ;;  %v364_v16 = vpop.permute.xlu0 %363 }
  0xdd   :  { %v365_v20 = vrot.slane %v364_v16, 2 }
  0xde   :  { %v412_v23 = vsub.f32 %v814_v10, %v821_v14  ;;  %v380_v24 = vsel %vm275_vm1, %v378_v12, %v379_v15 }
  0xdf   :  { %v382_v27 = vadd.f32 %v380_v24, %v261_v17  ;;  %v366_v28 = vsel %vm275_vm1, %v364_v16, %v365_v20  ;;  %v311_v29 = vpop.permute.xlu1 %310 }
  0xe0   :  { %v368_v31 = vadd.f32 %v366_v28, %v247_v18  ;;  %v312_v33 = vrot.slane %v311_v29, 2  ;;  %v281_v34 = vpop.permute.xlu0 %280 }
  0xe1   :  { %v282_v38 = vrot.slane %v281_v34, 2 }
  0xe2   :  { %v425_v41 = vsub.f32 %v382_v27, %v368_v31  ;;  %v313_v0 = vsel %vm275_vm1, %v311_v29, %v312_v33 }
  0xe3   :  { %v315_v43 = vadd.f32 %v313_v0, %v194_v60  ;;  %v283_v45 = vsel %vm275_vm1, %v281_v34, %v282_v38  ;;  %v371_v47 = vpop.permute.xlu1 %370 }
  0xe4   :  { %v285_v49 = vadd.f32 %v283_v45, %v164_v39  ;;  %v372_v51 = vrot.slane %v371_v47, 2  ;;  %v341_v52 = vpop.permute.xlu0 %340 }
  0xe5   :  { %v395_v4 = vsub.f32 %v796_v55, %v315_v43  ;;  %v400_v54 = vsub.f32 %v399_v7, %v315_v43  ;;  %v342_v56 = vrot.slane %v341_v52, 2  ;;  %v428_v7 = vstv %s836_s29 }
  0xe6   :  { %v383_v62 = vsub.f32 %v777_v37, %v285_v49  ;;  %v388_v6 = vsub.f32 %v387_v46, %v285_v49  ;;  %v373_v63 = vsel %vm275_vm1, %v371_v47, %v372_v51  ;;  %v410_v37 = vstv %s840_s30 }
  0xe7   :  { %v398_v2 = vadd.f32 %v397_v35, %v395_v4  ;;  %v403_v1 = vadd.f32 %v402_v36, %v400_v54  ;;  %v375_v3 = vadd.f32 %v373_v63, %v254_v53  ;;  %v343_v5 = vsel %vm275_vm1, %v341_v52, %v342_v56 }
  0xe8   :  { %v386_v8 = vadd.f32 %v385_v44, %v383_v62  ;;  %v391_v55 = vadd.f32 %v390_v48, %v388_v6  ;;  %v345_v9 = vadd.f32 %v343_v5, %v224_v61  ;;  %v415_v46 = vstv %s844_s7 }
  0xe9   :  { %405 = vst [vmem:[#allocation14 + $0x2] sm:$0x3] %v398_v2  ;;  %407 = vst [vmem:[#allocation14 + $0xa] sm:$0x3] %v403_v1  ;;  %v421_v57 = vsub.f32 %v368_v31, %v375_v3  ;;  %v426_v32 = vsub.f32 %v425_v41, %v375_v3 }
  0xea   :  { %392 = vst [vmem:[#allocation14] sm:$0x3] %v386_v8  ;;  %394 = vst [vmem:[#allocation14 + $0x8] sm:$0x3] %v391_v55  ;;  %v408_v10 = vsub.f32 %v821_v14, %v345_v9  ;;  %v413_v11 = vsub.f32 %v412_v23, %v345_v9 }
  0xeb   :  { %v424_v12 = vadd.f32 %v423_v50, %v421_v57  ;;  %v429_v58 = vadd.f32 %v428_v7, %v426_v32 }
  0xec   :  { %v411_v13 = vadd.f32 %v410_v37, %v408_v10  ;;  %v416_v15 = vadd.f32 %v415_v46, %v413_v11 }
  0xed   :  { %431 = vst [vmem:[#allocation14 + $0x6] sm:$0x3] %v424_v12  ;;  %433 = vst [vmem:[#allocation14 + $0xe] sm:$0x3] %v429_v58 }
  0xee   :  { %418 = vst [vmem:[#allocation14 + $0x4] sm:$0x3] %v411_v13  ;;  %420 = vst [vmem:[#allocation14 + $0xc] sm:$0x3] %v416_v15 }
  0xef   :  { %592 = shalt.err (!%p589_p10)
}
  0xf0   :  { %s622_s11 = smov 32   ;;  %s623_s12 = smov 2  }
  0xf1   :  { %445 = dma.vmem_to_hbm [thread:$0]  %s440_s9, 256, %s875_s6, [#allocation4], %s622_s11, %s622_s11, %s623_s12  }
  0xf2   :  { %611 = dma.done.wait [#allocation4], 256  }
  0xf3   :  { %612 = vsyncadd [#allocation4], 4294967040 }
  0xf4   :  { %449 = vsyncpa [#allocation3], 1 }
  0xf5   :  { %450 = vsyncpa [#allocation4], 1 }
  0xf6   :  { %451 = vsyncpa [#allocation5], 1 }
  0xf7   :  { %452 = vsyncpa [#allocation9], 1 }
  0xf8   :  { %453 = vsyncpa [#allocation6], 1 }
  0xf9   :  { %454 = vsyncpa [#allocation12], 1 }

</bundles_post_ra>
